<compile_context>
chip_gen: v7x
topology: tpu7x:2x2x1
jax: 0.10.0
libtpu: 0.0.40
codegen_flags: <defaults>
</compile_context>

<pallas_src>
import jax
import jax.numpy as jnp
from jax import lax
from jax.experimental import pallas as pl
from jax.experimental.pallas import tpu as pltpu

SQRT_2_OVER_PI = 0.7978845608028654  # sqrt(2/pi)


def _round_up(x, m):
    return ((x + m - 1) // m) * m


def mlp_kernel(x_ref, wfc_ref, bfc_ref, wproj_ref, bproj_ref, o_ref):
    # x_ref: (tm, C); wfc_ref: (4C, C); bfc_ref: (1, 4C);
    # wproj_ref: (C, 4C); bproj_ref: (1, C); o_ref: (tm, C).
    x = x_ref[...]
    # c_fc: x @ W_fc^T + b_fc — contract on the weight's native last dim so no
    # wrapper-side transpose (and no extra HBM copy) is needed.
    h = lax.dot_general(
        x, wfc_ref[...],
        dimension_numbers=(((1,), (1,)), ((), ())),
        preferred_element_type=jnp.float32) + bfc_ref[...].astype(jnp.float32)
    # GELU(approximate='tanh') in f32.
    g = 0.5 * h * (1.0 + jnp.tanh(SQRT_2_OVER_PI * (h + 0.044715 * h * h * h)))
    # c_proj: g @ W_proj^T + b_proj.
    o = lax.dot_general(
        g.astype(wproj_ref.dtype), wproj_ref[...],
        dimension_numbers=(((1,), (1,)), ((), ())),
        preferred_element_type=jnp.float32) + bproj_ref[...].astype(jnp.float32)
    o_ref[...] = o.astype(o_ref.dtype)


def mlp_forward(x, w_fc, b_fc, w_proj, b_proj, *, tile_m=256, matmul_dtype=None):
    """nanoGPT MLP forward.

    x: (B, T, C); w_fc: (4C, C); b_fc: (4C,); w_proj: (C, 4C); b_proj: (C,)
    — same layouts as the torch nn.Linear parameters (no pre-transpose needed).
    matmul_dtype: optionally run the matmuls in bf16 (v6e/v7x) with f32 accum.
    """
    B, T, C = x.shape
    H = w_fc.shape[0]  # 4*C
    out_dtype = x.dtype
    M = B * T

    if matmul_dtype is not None:
        x = x.astype(matmul_dtype)
        w_fc = w_fc.astype(matmul_dtype)
        w_proj = w_proj.astype(matmul_dtype)

    # Row tiling: big MXU-friendly tiles, clamped to the (8-aligned) problem
    # size, with zero padding instead of a divisibility assert.
    tile_m = max(8, min(tile_m, _round_up(M, 8)))
    m_pad = _round_up(M, tile_m)
    x2d = x.reshape(M, C)
    if m_pad != M:
        x2d = jnp.pad(x2d, ((0, m_pad - M), (0, 0)))
    grid_m = m_pad // tile_m

    bfc_2d = b_fc.reshape(1, H)
    bproj_2d = b_proj.reshape(1, C)

    # VMEM budget: invariant weight/bias blocks (still double-buffered by the
    # default pipeline), double-buffered x/out tiles, and the f32 (tm, 4C)
    # hidden intermediates, with ~25% headroom.
    in_item = x2d.dtype.itemsize
    out_item = jnp.dtype(out_dtype).itemsize
    weight_bytes = 2 * (w_fc.size * w_fc.dtype.itemsize
                        + w_proj.size * w_proj.dtype.itemsize
                        + bfc_2d.size * bfc_2d.dtype.itemsize
                        + bproj_2d.size * bproj_2d.dtype.itemsize)
    io_bytes = 2 * (tile_m * C * in_item + tile_m * C * out_item)
    scratch_bytes = 2 * tile_m * H * 4
    vmem_limit = int(min(128 * 1024 * 1024,
                         max(32 * 1024 * 1024,
                             (weight_bytes + io_bytes + scratch_bytes) * 5 // 4)))

    out = pl.pallas_call(
        mlp_kernel,
        out_shape=jax.ShapeDtypeStruct((m_pad, C), out_dtype),
        grid_spec=pltpu.PrefetchScalarGridSpec(
            num_scalar_prefetch=0,
            grid=(grid_m,),
            in_specs=[
                pl.BlockSpec((tile_m, C), lambda i: (i, 0)),   # x row tile
                pl.BlockSpec((H, C), lambda i: (0, 0)),        # W_fc (resident)
                pl.BlockSpec((1, H), lambda i: (0, 0)),        # b_fc
                pl.BlockSpec((C, H), lambda i: (0, 0)),        # W_proj (resident)
                pl.BlockSpec((1, C), lambda i: (0, 0)),        # b_proj
            ],
            out_specs=pl.BlockSpec((tile_m, C), lambda i: (i, 0)),
        ),
        compiler_params=pltpu.CompilerParams(
            dimension_semantics=("parallel",),
            vmem_limit_bytes=vmem_limit),
    )(x2d, w_fc, bfc_2d, w_proj, bproj_2d)

    if m_pad != M:
        out = out[:M]
    return out.reshape(B, T, C)


def _mlp_reference(x, w_fc, b_fc, w_proj, b_proj):
    h = x @ w_fc.T + b_fc
    g = 0.5 * h * (1.0 + jnp.tanh(SQRT_2_OVER_PI * (h + 0.044715 * h ** 3)))
    return g @ w_proj.T + b_proj


if __name__ == "__main__":
    key = jax.random.PRNGKey(0)
    kx, kwfc, kbfc, kwp, kbp, kx2 = jax.random.split(key, 6)

    # Small GPT-like config: batch=2, seq=8, n_embd=128 -> hidden=512
    # (lane-dense 128-wide output so stores are unmasked).
    B, T, C = 2, 8, 128
    H = 4 * C

    x = jax.random.normal(kx, (B, T, C), dtype=jnp.float32)
    # nn.Linear(n_embd, 4*n_embd): weight (4C, C), bias (4C,)
    w_fc = jax.random.normal(kwfc, (H, C), dtype=jnp.float32) * 0.02
    b_fc = jax.random.normal(kbfc, (H,), dtype=jnp.float32) * 0.02
    # nn.Linear(4*n_embd, n_embd): weight (C, 4C), bias (C,)
    w_proj = jax.random.normal(kwp, (C, H), dtype=jnp.float32) * 0.02
    b_proj = jax.random.normal(kbp, (C,), dtype=jnp.float32) * 0.02

    out = mlp_forward(x, w_fc, b_fc, w_proj, b_proj)
    jax.block_until_ready(out)
    ref = _mlp_reference(x, w_fc, b_fc, w_proj, b_proj)
    assert out.shape == (B, T, C)
    assert jnp.allclose(out, ref, atol=1e-4, rtol=1e-4), \
        float(jnp.max(jnp.abs(out - ref)))

    # Also exercise the padded path (B*T not a multiple of the row tile).
    T2 = 7
    x2 = jax.random.normal(kx2, (B, T2, C), dtype=jnp.float32)
    out2 = mlp_forward(x2, w_fc, b_fc, w_proj, b_proj, tile_m=256)
    jax.block_until_ready(out2)
    ref2 = _mlp_reference(x2, w_fc, b_fc, w_proj, b_proj)
    assert jnp.allclose(out2, ref2, atol=1e-4, rtol=1e-4)

    print("KERNEL_OK")
</pallas_src>

<mosaic_0001>
module attributes {stable_mosaic.version = 11 : i64} {
  func.func @mlp_kernel(%arg0: i32, %arg1: memref<16x128xf32, #tpu.memory_space<vmem>>, %arg2: memref<512x128xf32, #tpu.memory_space<vmem>>, %arg3: memref<1x512xf32, #tpu.memory_space<vmem>>, %arg4: memref<128x512xf32, #tpu.memory_space<vmem>>, %arg5: memref<1x128xf32, #tpu.memory_space<vmem>>, %arg6: memref<16x128xf32, #tpu.memory_space<vmem>>) attributes {dimension_semantics = [#tpu.dimension_semantics<parallel>], iteration_bounds = array<i64: 1>, scalar_prefetch = 0 : i64, scratch_operands = 0 : i64, tpu.core_type = #tpu.core_type<tc>, window_params = [{transform_indices = @transform_0, window_bounds = array<i64: 16, 128>}, {pipeline_mode = #tpu.pipeline_mode<synchronous>, transform_indices = @transform_1, window_bounds = array<i64: 512, 128>}, {pipeline_mode = #tpu.pipeline_mode<synchronous>, transform_indices = @transform_2, window_bounds = array<i64: 1, 512>}, {pipeline_mode = #tpu.pipeline_mode<synchronous>, transform_indices = @transform_3, window_bounds = array<i64: 128, 512>}, {pipeline_mode = #tpu.pipeline_mode<synchronous>, transform_indices = @transform_4, window_bounds = array<i64: 1, 128>}, {transform_indices = @transform_5, window_bounds = array<i64: 16, 128>}]} {
    %c0 = arith.constant 0 : index
    %c0_0 = arith.constant 0 : index
    %0 = vector.load %arg1[%c0, %c0_0] : memref<16x128xf32, #tpu.memory_space<vmem>>, vector<16x128xf32>
    %c0_1 = arith.constant 0 : index
    %c0_2 = arith.constant 0 : index
    %1 = vector.load %arg2[%c0_1, %c0_2] : memref<512x128xf32, #tpu.memory_space<vmem>>, vector<512x128xf32>
    %cst = arith.constant dense<0.000000e+00> : vector<16x512xf32>
    %2 = tpu.matmul %0, %1, %cst {dimension_numbers = #tpu.dot_dimension_numbers<[1], [1], [0], [0], [0, 0, 1, 0], [], []>} : vector<16x128xf32>, vector<512x128xf32>, vector<16x512xf32> -> vector<16x512xf32>
    %c0_3 = arith.constant 0 : index
    %c0_4 = arith.constant 0 : index
    %3 = vector.load %arg3[%c0_3, %c0_4] : memref<1x512xf32, #tpu.memory_space<vmem>>, vector<1x512xf32>
    %4 = vector.broadcast %3 : vector<1x512xf32> to vector<16x512xf32>
    %5 = arith.addf %2, %4 : vector<16x512xf32>
    %cst_5 = arith.constant 5.000000e-01 : f32
    %6 = vector.broadcast %cst_5 : f32 to vector<16x512xf32>
    %7 = arith.mulf %6, %5 : vector<16x512xf32>
    %cst_6 = arith.constant 4.471500e-02 : f32
    %8 = vector.broadcast %cst_6 : f32 to vector<16x512xf32>
    %9 = arith.mulf %8, %5 : vector<16x512xf32>
    %10 = arith.mulf %9, %5 : vector<16x512xf32>
    %11 = arith.mulf %10, %5 : vector<16x512xf32>
    %12 = arith.addf %5, %11 : vector<16x512xf32>
    %cst_7 = arith.constant 0.797884583 : f32
    %13 = vector.broadcast %cst_7 : f32 to vector<16x512xf32>
    %14 = arith.mulf %13, %12 : vector<16x512xf32>
    %15 = math.tanh %14 : vector<16x512xf32>
    %cst_8 = arith.constant 1.000000e+00 : f32
    %16 = vector.broadcast %cst_8 : f32 to vector<16x512xf32>
    %17 = arith.addf %16, %15 : vector<16x512xf32>
    %18 = arith.mulf %7, %17 : vector<16x512xf32>
    %c0_9 = arith.constant 0 : index
    %c0_10 = arith.constant 0 : index
    %19 = vector.load %arg4[%c0_9, %c0_10] : memref<128x512xf32, #tpu.memory_space<vmem>>, vector<128x512xf32>
    %cst_11 = arith.constant dense<0.000000e+00> : vector<16x128xf32>
    %20 = tpu.matmul %18, %19, %cst_11 {dimension_numbers = #tpu.dot_dimension_numbers<[1], [1], [0], [0], [0, 0, 1, 0], [], []>} : vector<16x512xf32>, vector<128x512xf32>, vector<16x128xf32> -> vector<16x128xf32>
    %c0_12 = arith.constant 0 : index
    %c0_13 = arith.constant 0 : index
    %21 = vector.load %arg5[%c0_12, %c0_13] : memref<1x128xf32, #tpu.memory_space<vmem>>, vector<1x128xf32>
    %22 = vector.broadcast %21 : vector<1x128xf32> to vector<16x128xf32>
    %23 = arith.addf %20, %22 : vector<16x128xf32>
    %c0_14 = arith.constant 0 : index
    %c0_15 = arith.constant 0 : index
    %24 = vector.load %arg6[%c0_14, %c0_15] : memref<16x128xf32, #tpu.memory_space<vmem>>, vector<16x128xf32>
    tpu.vector_store %arg6[%c0_14, %c0_15], %23 {strides = array<i32>} : memref<16x128xf32, #tpu.memory_space<vmem>>, vector<16x128xf32>,
    return
  }
  func.func @transform_0(%arg0: i32) -> (i32, i32) {
    %c0_i32 = arith.constant 0 : i32
    %c0_i32_0 = arith.constant 0 : i32
    return %arg0, %c0_i32 : i32, i32
  }
  func.func @transform_1(%arg0: i32) -> (i32, i32) {
    %c0_i32 = arith.constant 0 : i32
    %c0_i32_0 = arith.constant 0 : i32
    %c0_i32_1 = arith.constant 0 : i32
    return %c0_i32, %c0_i32_0 : i32, i32
  }
  func.func @transform_2(%arg0: i32) -> (i32, i32) {
    %c0_i32 = arith.constant 0 : i32
    %c0_i32_0 = arith.constant 0 : i32
    %c0_i32_1 = arith.constant 0 : i32
    return %c0_i32, %c0_i32_0 : i32, i32
  }
  func.func @transform_3(%arg0: i32) -> (i32, i32) {
    %c0_i32 = arith.constant 0 : i32
    %c0_i32_0 = arith.constant 0 : i32
    %c0_i32_1 = arith.constant 0 : i32
    return %c0_i32, %c0_i32_0 : i32, i32
  }
  func.func @transform_4(%arg0: i32) -> (i32, i32) {
    %c0_i32 = arith.constant 0 : i32
    %c0_i32_0 = arith.constant 0 : i32
    %c0_i32_1 = arith.constant 0 : i32
    return %c0_i32, %c0_i32_0 : i32, i32
  }
  func.func @transform_5(%arg0: i32) -> (i32, i32) {
    %c0_i32 = arith.constant 0 : i32
    %c0_i32_0 = arith.constant 0 : i32
    return %arg0, %c0_i32 : i32, i32
  }
}

</mosaic_0001>

<bundles_post_ra>
// kernel: tpu_custom_call.1
= control target key start
LH: loop header
LB: loop body
LE: loop exit
PB: predicated region body
PF: predicated region fallthrough
CT: control target
= control target key end

     0   :  { %10 = vsyncpa [#allocation3], 0  ;;  %s1068_s0 = inlined_call_operand.hbm [shape: f32[16,128], index: 0, kind: input, shape index: {}]   ;;  %s1069_s1 = inlined_call_operand.hbm [shape: f32[512,128], index: 1, kind: input, shape index: {}]   ;;  %s1070_s2 = inlined_call_operand.vmem [shape: f32[1,512], index: 2, kind: input, shape index: {}]   ;;  %s1071_s3 = inlined_call_operand.hbm [shape: f32[128,512], index: 3, kind: input, shape index: {}]   ;;  %s1072_s4 = inlined_call_operand.vmem [shape: f32[1,128], index: 4, kind: input, shape index: {}]   ;;  %s1073_s5 = inlined_call_operand.hbm [shape: f32[16,128], index: 5, kind: output, shape index: {}]  }
   0x1   :  { %11 = vsyncpa [#allocation6], 0 }
   0x2   :  { %12 = vsyncpa [#allocation4], 0  ;;  %s942_s18 = smov [#allocation5]   ;;  %s943_s20 = smov [#allocation2]  }
   0x3   :  { %s30_s19 = sshll.u32 %s942_s18, 4  ;;  %s18_s21 = sshll.u32 %s943_s20, 4  ;;  %s31_s19 = int_to_ptr.vmem [resolvable:$true] %s30_s19  ;;  %s980_s21 = int_to_ptr.vmem [resolvable:$true] %s18_s21 }
   0x4   :  { %s848_s24 = scalar_lea.hbm %s1069_s1, 8192 }
   0x5   :  { %p849_p0 = scmp.ne.s32.totalorder %s1069_s1, %s848_s24  ;;  %p852_p1 = scmp.lt.u32.totalorder %s848_s24, %s1069_s1 }
   0x7   :  { %p854_p2 = pnand %p852_p1, %p849_p0 }
   0x9   :  { %857 = shalt.err (!%p854_p2)
}
   0xa   :  { %s858_s29 = scalar_lea.vmem %s31_s19, 8192  ;;  %p863_p4 = scmp.lt.s32.totalorder %s31_s19, %s31_s19 }
   0xb   :  { %p859_p3 = scmp.ne.s32.totalorder %s31_s19, %s858_s29  ;;  %p864_p5 = scmp.lt.s32.totalorder %s858_s29, %s858_s29 }
   0xd   :  { %p865_p6 = por %p864_p5, %p863_p4 }
   0xf   :  { %p866_p7 = pnand %p865_p6, %p859_p3 }
  0x11   :  { %869 = shalt.err (!%p866_p7)
}
  0x12   :  { %s944_s30 = smov 128   ;;  %s945_s6 = smov 8  }
  0x13   :  { %36 = dma.hbm_to_vmem [thread:$0]  %s1069_s1, 8192, %s31_s19, [#allocation6], %s944_s30, %s944_s30, %s945_s6  }
  0x14   :  { %s870_s11 = scalar_lea.hbm %s1068_s0, 256 }
  0x15   :  { %p871_p8 = scmp.ne.s32.totalorder %s1068_s0, %s870_s11  ;;  %p874_p9 = scmp.lt.u32.totalorder %s870_s11, %s1068_s0 }
  0x17   :  { %p876_p10 = pnand %p874_p9, %p871_p8 }
  0x19   :  { %879 = shalt.err (!%p876_p10)
}
  0x1a   :  { %s880_s16 = scalar_lea.vmem %s980_s21, 256  ;;  %p885_p12 = scmp.lt.s32.totalorder %s980_s21, %s980_s21 }
  0x1b   :  { %p881_p11 = scmp.ne.s32.totalorder %s980_s21, %s880_s16  ;;  %p886_p13 = scmp.lt.s32.totalorder %s880_s16, %s880_s16 }
  0x1d   :  { %p887_p0 = por %p886_p13, %p885_p12 }
  0x1f   :  { %p888_p1 = pnand %p887_p0, %p881_p11 }
  0x21   :  { %891 = shalt.err (!%p888_p1)
}
  0x22   :  { %24 = dma.hbm_to_vmem [thread:$0]  %s1068_s0, 256, %s980_s21, [#allocation3], %s944_s30, %s944_s30, %s945_s6  }
  0x23   :  { %s946_s18 = smov [#allocation7]   ;;  %s892_s23 = scalar_lea.hbm %s1071_s3, 8192 }
  0x24   :  { %s44_s19 = sshll.u32 %s946_s18, 4  ;;  %p893_p2 = scmp.ne.s32.totalorder %s1071_s3, %s892_s23  ;;  %s45_s19 = int_to_ptr.vmem [resolvable:$true] %s44_s19 }
  0x25   :  { %p896_p3 = scmp.lt.u32.totalorder %s892_s23, %s1071_s3 }
  0x27   :  { %p898_p4 = pnand %p896_p3, %p893_p2 }
  0x29   :  { %901 = shalt.err (!%p898_p4)
}
  0x2a   :  { %s902_s28 = scalar_lea.vmem %s45_s19, 8192  ;;  %p907_p6 = scmp.lt.s32.totalorder %s45_s19, %s45_s19 }
  0x2b   :  { %p903_p5 = scmp.ne.s32.totalorder %s45_s19, %s902_s28  ;;  %p908_p7 = scmp.lt.s32.totalorder %s902_s28, %s902_s28 }
  0x2d   :  { %p909_p8 = por %p908_p7, %p907_p6 }
  0x2f   :  { %p910_p9 = pnand %p909_p8, %p903_p5 }
  0x31   :  { %913 = shalt.err (!%p910_p9)
}
  0x32   :  { %s947_s0 = smov 512   ;;  %s948_s21 = smov 32  }
  0x33   :  { %50 = dma.hbm_to_vmem [thread:$0]  %s1071_s3, 8192, %s45_s19, [#allocation6], %s947_s0, %s947_s0, %s948_s21  }
  0x34   :  { %936 = dma.done.wait [#allocation3], 256  }
  0x35   :  { %937 = vsyncadd [#allocation3], 4294967040 }
  0x36   :  { %938 = dma.done.wait [#allocation6], 16384  }
  0x37   :  { %939 = vsyncadd [#allocation6], 4294950912  ;;  %v80_v0 = vld [vmem:[#allocation5 + $0x80] sm:$0xff]  ;;  %v81_v1 = vld [vmem:[#allocation5 + $0x88] sm:$0xff]  ;;  %s949_s10 = smov [#allocation8]  }
  0x38   :  { %v64_v2 = vld [vmem:[#allocation5] sm:$0xff]  ;;  %v690_v3 = vpack.c.bf16 %v81_v1, %v80_v0  ;;  %v65_v4 = vld [vmem:[#allocation5 + $0x8] sm:$0xff]  ;;  %v82_v5 = vld [vmem:[#allocation5 + $0x90] sm:$0xff]  ;;  %s604_s11 = sshll.u32 %s949_s10, 4  ;;  %s605_s11 = int_to_ptr.vmem [resolvable:$true] %s604_s11 }
  0x39   :  { %v83_v6 = vld [vmem:[#allocation5 + $0x98] sm:$0xff]  ;;  %v692_v7 = vpack.c.bf16 %v65_v4, %v64_v2  ;;  %v66_v9 = vld [vmem:[#allocation5 + $0x10] sm:$0xff]  ;;  %v84_v11 = vld [vmem:[#allocation5 + $0xa0] sm:$0xff]  ;;  %s914_s12 = scalar_lea.vmem %s605_s11, 256  ;;  %p919_p11 = scmp.lt.s32.totalorder %s605_s11, %s605_s11 }
  0x3a   :  { %v694_v8 = vpack.c.bf16 %v83_v6, %v82_v5  ;;  %691 = vmatprep.subr.bf16.mxu1 %v690_v3  ;;  %v67_v10 = vld [vmem:[#allocation5 + $0x18] sm:$0xff]  ;;  %v85_v12 = vld [vmem:[#allocation5 + $0xa8] sm:$0xff]  ;;  %v1029_v15 = vld [vmem:[#allocation2] sm:$0xff]  ;;  %p915_p10 = scmp.ne.s32.totalorder %s605_s11, %s914_s12  ;;  %p920_p12 = scmp.lt.s32.totalorder %s914_s12, %s914_s12 }
  0x3b   :  { %693 = vmatpush3.bf16.xpose.msra.mxu1 %v692_v7  ;;  %v696_v13 = vpack.c.bf16 %v67_v10, %v66_v9  ;;  %v698_v14 = vpack.c.bf16 %v85_v12, %v84_v11  ;;  %650 = vmatprep.mubr.f32.mxu1 %v1029_v15  ;;  %v68_v16 = vld [vmem:[#allocation5 + $0x20] sm:$0xff]  ;;  %v69_v17 = vld [vmem:[#allocation5 + $0x28] sm:$0xff]  ;;  %v86_v18 = vld [vmem:[#allocation5 + $0xb0] sm:$0xff] }
  0x3c   :  { %695 = vmatprep.subr.bf16.mxu1 %v694_v8  ;;  %v87_v19 = vld [vmem:[#allocation5 + $0xb8] sm:$0xff]  ;;  %v700_v20 = vpack.c.bf16 %v69_v17, %v68_v16  ;;  %v70_v22 = vld [vmem:[#allocation5 + $0x30] sm:$0xff]  ;;  %v88_v24 = vld [vmem:[#allocation5 + $0xc0] sm:$0xff]  ;;  %p921_p13 = por %p920_p12, %p919_p11 }
  0x3d   :  { %v702_v21 = vpack.c.bf16 %v87_v19, %v86_v18  ;;  %v71_v23 = vld [vmem:[#allocation5 + $0x38] sm:$0xff]  ;;  %v89_v25 = vld [vmem:[#allocation5 + $0xc8] sm:$0xff]  ;;  %v376_v28 = vld [vmem:[#allocation7] sm:$0xff] }
  0x3e   :  { %v377_v26 = vld [vmem:[#allocation7 + $0x8] sm:$0xff]  ;;  %v380_v30 = vld [vmem:[#allocation7 + $0x20] sm:$0xff]  ;;  %v704_v33 = vpack.c.bf16 %v71_v23, %v70_v22  ;;  %v706_v36 = vpack.c.bf16 %v89_v25, %v88_v24  ;;  %v90_v43 = vld [vmem:[#allocation5 + $0xd0] sm:$0xff]  ;;  %p922_p0 = pnand %p921_p13, %p915_p10 }
  0x3f   :  { %v381_v27 = vld [vmem:[#allocation7 + $0x28] sm:$0xff]  ;;  %v756_v34 = vpack.c.bf16 %v380_v30, %v376_v28  ;;  %v384_v37 = vld [vmem:[#allocation7 + $0x40] sm:$0xff]  ;;  %v91_v44 = vld [vmem:[#allocation5 + $0xd8] sm:$0xff] }
  0x40   :  { %v754_v29 = vpack.c.bf16 %v381_v27, %v377_v26  ;;  %v385_v31 = vld [vmem:[#allocation7 + $0x48] sm:$0xff]  ;;  %v388_v38 = vld [vmem:[#allocation7 + $0x60] sm:$0xff]  ;;  %v710_v48 = vpack.c.bf16 %v91_v44, %v90_v43  ;;  %v74_v53 = vld [vmem:[#allocation5 + $0x50] sm:$0xff] }
  0x41   :  { %v389_v32 = vld [vmem:[#allocation7 + $0x68] sm:$0xff]  ;;  %v72_v41 = vld [vmem:[#allocation5 + $0x40] sm:$0xff]  ;;  %v760_v45 = vpack.c.bf16 %v388_v38, %v384_v37  ;;  %v75_v54 = vld [vmem:[#allocation5 + $0x58] sm:$0xff] }
  0x42   :  { %v758_v35 = vpack.c.bf16 %v389_v32, %v385_v31  ;;  %755 = vmatprep.subr.bf16.mxu0 %v754_v29  ;;  %v393_v39 = vld [vmem:[#allocation7 + $0x88] sm:$0xff]  ;;  %v392_v49 = vld [vmem:[#allocation7 + $0x80] sm:$0xff]  ;;  %v712_v59 = vpack.c.bf16 %v75_v54, %v74_v53  ;;  %v94_v3 = vld [vmem:[#allocation5 + $0xf0] sm:$0xff] }
  0x43   :  { %697 = vmatpush3.bf16.xpose.msra.mxu1 %v696_v13  ;;  %757 = vmatpush1.bf16.xpose.msra.mxu0 %v756_v34  ;;  %v397_v40 = vld [vmem:[#allocation7 + $0xa8] sm:$0xff]  ;;  %v396_v50 = vld [vmem:[#allocation7 + $0xa0] sm:$0xff]  ;;  %v95_v4 = vld [vmem:[#allocation5 + $0xf8] sm:$0xff] }
  0x44   :  { %699 = vmatprep.subr.bf16.mxu1 %v698_v14  ;;  %759 = vmatprep.subr.bf16.mxu0 %v758_v35  ;;  %v73_v42 = vld [vmem:[#allocation5 + $0x48] sm:$0xff]  ;;  %v762_v46 = vpack.c.bf16 %v397_v40, %v393_v39  ;;  %v92_v55 = vld [vmem:[#allocation5 + $0xe0] sm:$0xff]  ;;  %v764_v57 = vpack.c.bf16 %v396_v50, %v392_v49  ;;  %v718_v8 = vpack.c.bf16 %v95_v4, %v94_v3  ;;  %v78_v11 = vld [vmem:[#allocation5 + $0x70] sm:$0xff] }
  0x45   :  { %v708_v47 = vpack.c.bf16 %v73_v42, %v72_v41  ;;  %v401_v51 = vld [vmem:[#allocation7 + $0xc8] sm:$0xff]  ;;  %v400_v61 = vld [vmem:[#allocation7 + $0xc0] sm:$0xff]  ;;  %v79_v12 = vld [vmem:[#allocation5 + $0x78] sm:$0xff] }
  0x46   :  { %v405_v52 = vld [vmem:[#allocation7 + $0xe8] sm:$0xff]  ;;  %v404_v62 = vld [vmem:[#allocation7 + $0xe0] sm:$0xff]  ;;  %v720_v17 = vpack.c.bf16 %v79_v12, %v78_v11  ;;  %v115_v22 = vld [vmem:[#allocation5 + $0x198] sm:$0xff] }
  0x47   :  { %v93_v56 = vld [vmem:[#allocation5 + $0xe8] sm:$0xff]  ;;  %v766_v58 = vpack.c.bf16 %v405_v52, %v401_v51  ;;  %v76_v1 = vld [vmem:[#allocation5 + $0x60] sm:$0xff]  ;;  %v768_v5 = vpack.c.bf16 %v404_v62, %v400_v61  ;;  %v63_v25 = vld [vmem:[#allocation2 + $0x8] sm:$0xff] }
  0x48   :  { %v714_v60 = vpack.c.bf16 %v93_v56, %v92_v55  ;;  %v409_v63 = vld [vmem:[#allocation7 + $0x108] sm:$0xff]  ;;  %v408_v9 = vld [vmem:[#allocation7 + $0x100] sm:$0xff]  ;;  %v98_v26 = vld [vmem:[#allocation5 + $0x110] sm:$0xff] }
  0x49   :  { %v413_v0 = vld [vmem:[#allocation7 + $0x128] sm:$0xff]  ;;  %v412_v10 = vld [vmem:[#allocation7 + $0x120] sm:$0xff]  ;;  %v99_v27 = vld [vmem:[#allocation5 + $0x118] sm:$0xff] }
  0x4a   :  { %v77_v2 = vld [vmem:[#allocation5 + $0x68] sm:$0xff]  ;;  %v770_v6 = vpack.c.bf16 %v413_v0, %v409_v63  ;;  %v112_v13 = vld [vmem:[#allocation5 + $0x180] sm:$0xff]  ;;  %v772_v16 = vpack.c.bf16 %v412_v10, %v408_v9  ;;  %v728_v30 = vpack.c.bf16 %v99_v27, %v98_v26  ;;  %v118_v34 = vld [vmem:[#allocation5 + $0x1b0] sm:$0xff] }
  0x4b   :  { %701 = vmatpush3.bf16.xpose.msra.mxu1 %v700_v20  ;;  %761 = vmatpush1.bf16.xpose.msra.mxu0 %v760_v45  ;;  %v716_v7 = vpack.c.bf16 %v77_v2, %v76_v1  ;;  %v113_v14 = vld [vmem:[#allocation5 + $0x188] sm:$0xff]  ;;  %v96_v19 = vld [vmem:[#allocation5 + $0x100] sm:$0xff]  ;;  %v119_v35 = vld [vmem:[#allocation5 + $0x1b8] sm:$0xff] }
  0x4c   :  { %703 = vmatprep.subr.bf16.mxu1 %v702_v21  ;;  %763 = vmatprep.subr.bf16.mxu0 %v762_v46  ;;  %v722_v18 = vpack.c.bf16 %v113_v14, %v112_v13  ;;  %v97_v20 = vld [vmem:[#allocation5 + $0x108] sm:$0xff]  ;;  %v114_v21 = vld [vmem:[#allocation5 + $0x190] sm:$0xff]  ;;  %v116_v28 = vld [vmem:[#allocation5 + $0x1a0] sm:$0xff]  ;;  %v734_v37 = vpack.c.bf16 %v119_v35, %v118_v34 }
  0x4d   :  { %v724_v23 = vpack.c.bf16 %v97_v20, %v96_v19  ;;  %v726_v24 = vpack.c.bf16 %v115_v22, %v114_v21  ;;  %v117_v29 = vld [vmem:[#allocation5 + $0x1a8] sm:$0xff]  ;;  %v100_v32 = vld [vmem:[#allocation5 + $0x120] sm:$0xff]  ;;  %v102_v38 = vld [vmem:[#allocation5 + $0x130] sm:$0xff]  ;;  %v130_v22 = vlaneseq }
  0x4e   :  { %v730_v31 = vpack.c.bf16 %v117_v29, %v116_v28  ;;  %v103_v39 = vld [vmem:[#allocation5 + $0x138] sm:$0xff]  ;;  %v120_v40 = vld [vmem:[#allocation5 + $0x1c0] sm:$0xff]  ;;  %v121_v41 = vld [vmem:[#allocation5 + $0x1c8] sm:$0xff] }
  0x4f   :  { %v736_v42 = vpack.c.bf16 %v103_v39, %v102_v38  ;;  %v738_v43 = vpack.c.bf16 %v121_v41, %v120_v40  ;;  %v104_v44 = vld [vmem:[#allocation5 + $0x140] sm:$0xff]  ;;  %v105_v45 = vld [vmem:[#allocation5 + $0x148] sm:$0xff]  ;;  %v122_v46 = vld [vmem:[#allocation5 + $0x1d0] sm:$0xff] }
  0x50   :  { %v106_v50 = vld [vmem:[#allocation5 + $0x150] sm:$0xff]  ;;  %v107_v51 = vld [vmem:[#allocation5 + $0x158] sm:$0xff]  ;;  %v124_v52 = vld [vmem:[#allocation5 + $0x1e0] sm:$0xff] }
  0x51   :  { %v125_v53 = vld [vmem:[#allocation5 + $0x1e8] sm:$0xff]  ;;  %v744_v54 = vpack.c.bf16 %v107_v51, %v106_v50  ;;  %v108_v56 = vld [vmem:[#allocation5 + $0x160] sm:$0xff]  ;;  %v110_v62 = vld [vmem:[#allocation5 + $0x170] sm:$0xff] }
  0x52   :  { %v746_v55 = vpack.c.bf16 %v125_v53, %v124_v52  ;;  %v111_v63 = vld [vmem:[#allocation5 + $0x178] sm:$0xff]  ;;  %v417_v1 = vld [vmem:[#allocation7 + $0x148] sm:$0xff]  ;;  %v416_v4 = vld [vmem:[#allocation7 + $0x140] sm:$0xff] }
  0x53   :  { %705 = vmatpush3.bf16.xpose.msra.mxu1 %v704_v33  ;;  %765 = vmatpush1.bf16.xpose.msra.mxu0 %v764_v57  ;;  %v101_v33 = vld [vmem:[#allocation5 + $0x128] sm:$0xff]  ;;  %v752_v0 = vpack.c.bf16 %v111_v63, %v110_v62  ;;  %v424_v10 = vld [vmem:[#allocation7 + $0x180] sm:$0xff]  ;;  %v379_v19 = vld [vmem:[#allocation7 + $0x18] sm:$0xff] }
  0x54   :  { %707 = vmatprep.subr.bf16.mxu1 %v706_v36  ;;  %767 = vmatprep.subr.bf16.mxu0 %v766_v58  ;;  %v732_v36 = vpack.c.bf16 %v101_v33, %v100_v32  ;;  %v109_v57 = vld [vmem:[#allocation5 + $0x168] sm:$0xff]  ;;  %v126_v58 = vld [vmem:[#allocation5 + $0x1f0] sm:$0xff]  ;;  %v428_v11 = vld [vmem:[#allocation7 + $0x1a0] sm:$0xff] }
  0x55   :  { %v421_v2 = vld [vmem:[#allocation7 + $0x168] sm:$0xff]  ;;  %v780_v14 = vpack.c.bf16 %v428_v11, %v424_v10  ;;  %v383_v20 = vld [vmem:[#allocation7 + $0x38] sm:$0xff] }
  0x56   :  { %v774_v3 = vpack.c.bf16 %v421_v2, %v417_v1  ;;  %v433_v12 = vld [vmem:[#allocation7 + $0x1c8] sm:$0xff]  ;;  %v786_v21 = vpack.c.bf16 %v383_v20, %v379_v19  ;;  %v391_v1 = vld [vmem:[#allocation7 + $0x78] sm:$0xff] }
  0x57   :  { %v437_v13 = vld [vmem:[#allocation7 + $0x1e8] sm:$0xff] }
  0x5b   :  { %709 = vmatpush3.bf16.xpose.msra.mxu1 %v708_v47  ;;  %769 = vmatpush1.bf16.xpose.msra.mxu0 %v768_v5  ;;  %v123_v47 = vld [vmem:[#allocation5 + $0x1d8] sm:$0xff]  ;;  %v420_v5 = vld [vmem:[#allocation7 + $0x160] sm:$0xff] }
  0x5c   :  { %711 = vmatprep.subr.bf16.mxu1 %v710_v48  ;;  %771 = vmatprep.subr.bf16.mxu0 %v770_v6  ;;  %v740_v48 = vpack.c.bf16 %v105_v45, %v104_v44  ;;  %v742_v49 = vpack.c.bf16 %v123_v47, %v122_v46  ;;  %v776_v6 = vpack.c.bf16 %v420_v5, %v416_v4 }
  0x63   :  { %713 = vmatpush3.bf16.xpose.msra.mxu1 %v712_v59  ;;  %773 = vmatpush1.bf16.xpose.msra.mxu0 %v772_v16  ;;  %v127_v59 = vld [vmem:[#allocation5 + $0x1f8] sm:$0xff]  ;;  %v432_v16 = vld [vmem:[#allocation7 + $0x1c0] sm:$0xff] }
  0x64   :  { %715 = vmatprep.subr.bf16.mxu1 %v714_v60  ;;  %v748_v60 = vpack.c.bf16 %v109_v57, %v108_v56  ;;  %v750_v61 = vpack.c.bf16 %v127_v59, %v126_v58  ;;  %775 = vmatprep.subr.bf16.mxu0 %v774_v3 }
  0x6b   :  { %717 = vmatpush3.bf16.xpose.msra.mxu1 %v716_v7  ;;  %v425_v7 = vld [vmem:[#allocation7 + $0x188] sm:$0xff]  ;;  %777 = vmatpush1.bf16.xpose.msra.mxu0 %v776_v6 }
  0x6c   :  { %719 = vmatprep.subr.bf16.mxu1 %v718_v8  ;;  %v429_v8 = vld [vmem:[#allocation7 + $0x1a8] sm:$0xff] }
  0x6d   :  { %v778_v9 = vpack.c.bf16 %v429_v8, %v425_v7 }
  0x6f   :  { %779 = vmatprep.subr.bf16.mxu0 %v778_v9 }
  0x73   :  { %721 = vmatpush3.bf16.xpose.msra.mxu1 %v720_v17  ;;  %781 = vmatpush1.bf16.xpose.msra.mxu0 %v780_v14  ;;  %v436_v17 = vld [vmem:[#allocation7 + $0x1e0] sm:$0xff] }
  0x74   :  { %723 = vmatprep.subr.bf16.mxu1 %v722_v18  ;;  %v784_v18 = vpack.c.bf16 %v436_v17, %v432_v16  ;;  %v390_v16 = vld [vmem:[#allocation7 + $0x70] sm:$0xff]  ;;  %v395_v17 = vld [vmem:[#allocation7 + $0x98] sm:$0xff] }
  0x7a   :  { %651 = vmatmul.mubr.f32.vlgmr.msra.gmra.mrb[0].mxu1 %v1029_v15 }
  0x7b   :  { %725 = vmatpush3.bf16.xpose.msra.mxu1 %v724_v23  ;;  %652 = vmatprep.mubr.f32.mxu1 %v63_v25  ;;  %v1035_v23 = vshrl.u32 %v130_v22, 7  ;;  %v398_v22 = vld [vmem:[#allocation7 + $0xb0] sm:$0xff] }
  0x7c   :  { %727 = vmatprep.subr.bf16.mxu1 %v726_v24 }
  0x7d   :  { %v132_v24 = vsub.s32 0, %v1035_v23  ;;  %v136_v26 = vsub.s32 1, %v1035_v23 }
  0x7e   :  { %653 = vmatmul.mubr.f32.gmra.mrb[2].mxu1 %v63_v25 }
  0x7f   :  { %686 = vmatprep.mubr.f32.mxu1 %v1029_v15 }
  0x83   :  { %729 = vmatpush3.bf16.xpose.msra.mxu1 %v728_v30 }
  0x84   :  { %731 = vmatprep.subr.bf16.mxu1 %v730_v31 }
  0x8b   :  { %733 = vmatpush3.bf16.xpose.msra.mxu1 %v732_v36 }
  0x8c   :  { %735 = vmatprep.subr.bf16.mxu1 %v734_v37 }
  0x93   :  { %737 = vmatpush3.bf16.xpose.msra.mxu1 %v736_v42 }
  0x94   :  { %739 = vmatprep.subr.bf16.mxu1 %v738_v43 }
  0x9b   :  { %741 = vmatpush3.bf16.xpose.msra.mxu1 %v740_v48 }
  0x9c   :  { %743 = vmatprep.subr.bf16.mxu1 %v742_v49 }
  0xa3   :  { %745 = vmatpush3.bf16.xpose.msra.mxu1 %v744_v54 }
  0xa4   :  { %747 = vmatprep.subr.bf16.mxu1 %v746_v55 }
  0xab   :  { %749 = vmatpush3.bf16.xpose.msra.mxu1 %v748_v60  ;;  %v378_v60 = vld [vmem:[#allocation7 + $0x10] sm:$0xff] }
  0xac   :  { %751 = vmatprep.subr.bf16.mxu1 %v750_v61  ;;  %v382_v61 = vld [vmem:[#allocation7 + $0x30] sm:$0xff] }
  0xad   :  { %v788_v6 = vpack.c.bf16 %v382_v61, %v378_v60 }
  0xb3   :  { %753 = vmatpush3.bf16.xpose.msra.mxu1 %v752_v0  ;;  %v387_v0 = vld [vmem:[#allocation7 + $0x58] sm:$0xff] }
  0xb4   :  { %v790_v10 = vpack.c.bf16 %v391_v1, %v387_v0  ;;  %v426_v0 = vld [vmem:[#allocation7 + $0x190] sm:$0xff] }
  0xb5   :  { %v430_v1 = vld [vmem:[#allocation7 + $0x1b0] sm:$0xff] }
  0xba   :  { %687 = vmatmul.mubr.f32.vlgmr.msra.gmra.mrb[4].mxu1 %v1029_v15  ;;  %v782_v15 = vpack.c.bf16 %v437_v13, %v433_v12 }
  0xbb   :  { %688 = vmatprep.mubr.f32.mxu1 %v63_v25 }
  0xbc   :  { %783 = vmatprep.subr.bf16.mxu0 %v782_v15  ;;  %v386_v15 = vld [vmem:[#allocation7 + $0x50] sm:$0xff] }
  0xbd   :  { %785 = vmatpush1.bf16.xpose.msra.mxu0 %v784_v18  ;;  %v399_v18 = vld [vmem:[#allocation7 + $0xb8] sm:$0xff]  ;;  %v792_v19 = vpack.c.bf16 %v390_v16, %v386_v15 }
  0xbe   :  { %689 = vmatmul.mubr.f32.gmra.mrb[6].mxu1 %v63_v25  ;;  %787 = vmatprep.subr.bf16.mxu0 %v786_v21  ;;  %v1041_v25 = vld [vmem:[%s1070_s2] sm:$0xf]  ;;  %v794_v20 = vpack.c.bf16 %v399_v18, %v395_v17 }
  0xbf   :  { %v133_v27 = vrot.slane %v1041_v25, %v132_v24  ;;  %v137_v28 = vrot.slane %v1041_v25, %v136_v26  ;;  %v394_v21 = vld [vmem:[#allocation7 + $0x90] sm:$0xff]  ;;  %v403_v24 = vld [vmem:[#allocation7 + $0xd8] sm:$0xff] }
  0xc0   :  { %v407_v26 = vld [vmem:[#allocation7 + $0xf8] sm:$0xff]  ;;  %v434_v18 = vld [vmem:[#allocation7 + $0x1d0] sm:$0xff] }
 0x14d   :  { %v216_v29 = vpop.f32.mrb[0].mxu1 }
 0x14e   :  { %v217_v30 = vadd.f32 %v216_v29, %v133_v27  ;;  %v218_v31 = vpop.f32.mrb[1].mxu1  ;;  %v402_v29 = vld [vmem:[#allocation7 + $0xd0] sm:$0xff] }
 0x14f   :  { %v219_v32 = vadd.f32 %v218_v31, %v137_v28  ;;  %v411_v31 = vld [vmem:[#allocation7 + $0x118] sm:$0xff] }
 0x150   :  { %v312_v33 = vmul.f32 0.044715, %v217_v30  ;;  %v304_v2 = vmul.f32 0.5, %v217_v30 }
 0x151   :  { %v313_v34 = vmul.f32 0.044715, %v219_v32  ;;  %v222_v35 = vpop.f32.mrb[2].mxu1  ;;  %v305_v62 = vmul.f32 0.5, %v219_v32 }
 0x152   :  { %v320_v36 = vmul.f32 %v312_v33, %v217_v30  ;;  %v223_v37 = vadd.f32 %v222_v35, %v133_v27  ;;  %v224_v38 = vpop.f32.mrb[3].mxu1  ;;  %v796_v27 = vpack.c.bf16 %v398_v22, %v394_v21  ;;  %v410_v35 = vld [vmem:[#allocation7 + $0x110] sm:$0xff] }
 0x153   :  { %v321_v39 = vmul.f32 %v313_v34, %v219_v32  ;;  %v225_v40 = vadd.f32 %v224_v38, %v137_v28  ;;  %v798_v28 = vpack.c.bf16 %v407_v26, %v403_v24  ;;  %v419_v38 = vld [vmem:[#allocation7 + $0x158] sm:$0xff] }
 0x154   :  { %v328_v41 = vmul.f32 %v320_v36, %v217_v30  ;;  %v316_v42 = vmul.f32 0.044715, %v223_v37  ;;  %v308_v3 = vmul.f32 0.5, %v223_v37  ;;  %v414_v36 = vld [vmem:[#allocation7 + $0x130] sm:$0xff] }
 0x155   :  { %v329_v43 = vmul.f32 %v321_v39, %v219_v32  ;;  %v317_v44 = vmul.f32 0.044715, %v225_v40  ;;  %v309_v7 = vmul.f32 0.5, %v225_v40  ;;  %v423_v39 = vld [vmem:[#allocation7 + $0x178] sm:$0xff] }
 0x156   :  { %v336_v45 = vadd.f32 %v328_v41, %v217_v30  ;;  %v324_v46 = vmul.f32 %v316_v42, %v223_v37  ;;  %v406_v30 = vld [vmem:[#allocation7 + $0xf0] sm:$0xff]  ;;  %v804_v41 = vpack.c.bf16 %v414_v36, %v410_v35  ;;  %v806_v42 = vpack.c.bf16 %v423_v39, %v419_v38 }
 0x157   :  { %v337_v47 = vadd.f32 %v329_v43, %v219_v32  ;;  %v325_v48 = vmul.f32 %v317_v44, %v225_v40  ;;  %v415_v32 = vld [vmem:[#allocation7 + $0x138] sm:$0xff]  ;;  %v800_v33 = vpack.c.bf16 %v406_v30, %v402_v29 }
 0x158   :  { %v344_v49 = vmul.f32 0.7978846, %v336_v45  ;;  %v332_v50 = vmul.f32 %v324_v46, %v223_v37  ;;  %v802_v34 = vpack.c.bf16 %v415_v32, %v411_v31  ;;  %v418_v46 = vld [vmem:[#allocation7 + $0x150] sm:$0xff] }
 0x159   :  { %v345_v51 = vmul.f32 0.7978846, %v337_v47  ;;  %v333_v52 = vmul.f32 %v325_v48, %v225_v40  ;;  %v422_v47 = vld [vmem:[#allocation7 + $0x170] sm:$0xff] }
 0x15a   :  { %832 = vtanh.f32 %v344_v49  ;;  %v340_v53 = vadd.f32 %v332_v50, %v223_v37  ;;  %v140_v37 = vsub.s32 2, %v1035_v23  ;;  %v427_v50 = vld [vmem:[#allocation7 + $0x198] sm:$0xff] }
 0x15b   :  { %834 = vtanh.f32 %v345_v51  ;;  %v341_v54 = vadd.f32 %v333_v52, %v225_v40  ;;  %v144_v40 = vsub.s32 3, %v1035_v23  ;;  %v431_v51 = vld [vmem:[#allocation7 + $0x1b8] sm:$0xff] }
 0x15c   :  { %v348_v55 = vmul.f32 0.7978846, %v340_v53  ;;  %v141_v43 = vrot.slane %v1041_v25, %v140_v37 }
 0x15d   :  { %v349_v56 = vmul.f32 0.7978846, %v341_v54  ;;  %v145_v44 = vrot.slane %v1041_v25, %v144_v40  ;;  %v808_v54 = vpack.c.bf16 %v422_v47, %v418_v46  ;;  %v617_v40 = vld [vmem:[%s1072_s4] ss:$0 sm:$0xff] }
 0x15e   :  { %836 = vtanh.f32 %v348_v55 }
 0x15f   :  { %838 = vtanh.f32 %v349_v56  ;;  %v810_v56 = vpack.c.bf16 %v431_v51, %v427_v50 }
 0x164   :  { %v833_v57 = vpop.eup %832 }
 0x165   :  { %v835_v58 = vpop.eup %834  ;;  %v360_v59 = vadd.f32 1.0, %v833_v57 }
 0x166   :  { %v361_v63 = vadd.f32 1.0, %v835_v58 }
 0x167   :  { %v368_v9 = vmul.f32 %v360_v59, %v304_v2 }
 0x168   :  { %v837_v4 = vpop.eup %836  ;;  %v369_v5 = vmul.f32 %v361_v63, %v305_v62 }
 0x169   :  { %v839_v8 = vpop.eup %838  ;;  %v364_v11 = vadd.f32 1.0, %v837_v4 }
 0x16a   :  { %511 = vmatprep.mubr.f32.mxu0 %v369_v5  ;;  %v365_v12 = vadd.f32 1.0, %v839_v8  ;;  %v435_v5 = vld [vmem:[#allocation7 + $0x1d8] sm:$0xff] }
 0x16b   :  { %512 = vmatmul.mubr.f32.vlgmr.msra.gmra.mrb[0].mxu0 %v368_v9  ;;  %v372_v13 = vmul.f32 %v364_v11, %v308_v3 }
 0x16c   :  { %789 = vmatpush1.bf16.xpose.msra.mxu0 %v788_v6  ;;  %v373_v14 = vmul.f32 %v365_v12, %v309_v7  ;;  %v439_v6 = vld [vmem:[#allocation7 + $0x1f8] sm:$0xff] }
 0x16d   :  { %791 = vmatprep.subr.bf16.mxu0 %v790_v10  ;;  %v812_v10 = vpack.c.bf16 %v430_v1, %v426_v0  ;;  %v814_v12 = vpack.c.bf16 %v439_v6, %v435_v5 }
 0x16e   :  { %516 = vmatprep.mubr.f32.mxu0 %v373_v14 }
 0x16f   :  { %517 = vmatmul.mubr.f32.gmra.mrb[2].mxu0 %v372_v13 }
 0x174   :  { %793 = vmatpush1.bf16.xpose.msra.mxu0 %v792_v19  ;;  %v438_v19 = vld [vmem:[#allocation7 + $0x1f0] sm:$0xff] }
 0x175   :  { %795 = vmatprep.subr.bf16.mxu0 %v794_v20  ;;  %v816_v21 = vpack.c.bf16 %v438_v19, %v434_v18 }
 0x17c   :  { %797 = vmatpush1.bf16.xpose.msra.mxu0 %v796_v27 }
 0x17d   :  { %799 = vmatprep.subr.bf16.mxu0 %v798_v28 }
 0x184   :  { %801 = vmatpush1.bf16.xpose.msra.mxu0 %v800_v33 }
 0x185   :  { %803 = vmatprep.subr.bf16.mxu0 %v802_v34 }
 0x18c   :  { %805 = vmatpush1.bf16.xpose.msra.mxu0 %v804_v41 }
 0x18d   :  { %v293_v45 = vpop.f32.mrb[4].mxu1  ;;  %807 = vmatprep.subr.bf16.mxu0 %v806_v42 }
 0x18e   :  { %v294_v48 = vadd.f32 %v293_v45, %v141_v43  ;;  %v295_v49 = vpop.f32.mrb[5].mxu1 }
 0x18f   :  { %v296_v52 = vadd.f32 %v295_v49, %v145_v44 }
 0x190   :  { %v314_v53 = vmul.f32 0.044715, %v294_v48  ;;  %v306_v29 = vmul.f32 0.5, %v294_v48 }
 0x191   :  { %v315_v55 = vmul.f32 0.044715, %v296_v52  ;;  %v299_v23 = vpop.f32.mrb[6].mxu1  ;;  %v307_v27 = vmul.f32 0.5, %v296_v52 }
 0x192   :  { %v322_v57 = vmul.f32 %v314_v53, %v294_v48  ;;  %v300_v58 = vadd.f32 %v299_v23, %v141_v43  ;;  %v301_v59 = vpop.f32.mrb[7].mxu1 }
 0x193   :  { %v323_v60 = vmul.f32 %v315_v55, %v296_v52  ;;  %v302_v25 = vadd.f32 %v301_v59, %v145_v44 }
 0x194   :  { %v330_v61 = vmul.f32 %v322_v57, %v294_v48  ;;  %v318_v62 = vmul.f32 0.044715, %v300_v58  ;;  %809 = vmatpush1.bf16.xpose.msra.mxu0 %v808_v54  ;;  %v310_v37 = vmul.f32 0.5, %v300_v58 }
 0x195   :  { %v319_v63 = vmul.f32 0.044715, %v302_v25  ;;  %811 = vmatprep.subr.bf16.mxu0 %v810_v56  ;;  %v331_v2 = vmul.f32 %v323_v60, %v296_v52  ;;  %v311_v35 = vmul.f32 0.5, %v302_v25 }
 0x196   :  { %v338_v3 = vadd.f32 %v330_v61, %v294_v48  ;;  %v326_v4 = vmul.f32 %v318_v62, %v300_v58 }
 0x197   :  { %v327_v7 = vmul.f32 %v319_v63, %v302_v25  ;;  %v339_v8 = vadd.f32 %v331_v2, %v296_v52 }
 0x198   :  { %v346_v9 = vmul.f32 0.7978846, %v338_v3  ;;  %v334_v11 = vmul.f32 %v326_v4, %v300_v58 }
 0x199   :  { %v347_v13 = vmul.f32 0.7978846, %v339_v8  ;;  %v335_v14 = vmul.f32 %v327_v7, %v302_v25 }
 0x19a   :  { %840 = vtanh.f32 %v346_v9  ;;  %v342_v15 = vadd.f32 %v334_v11, %v300_v58 }
 0x19b   :  { %842 = vtanh.f32 %v347_v13  ;;  %v343_v16 = vadd.f32 %v335_v14, %v302_v25 }
 0x19c   :  { %813 = vmatpush1.bf16.xpose.msra.mxu0 %v812_v10  ;;  %v350_v17 = vmul.f32 0.7978846, %v342_v15 }
 0x19d   :  { %815 = vmatprep.subr.bf16.mxu0 %v814_v12  ;;  %v351_v20 = vmul.f32 0.7978846, %v343_v16 }
 0x19e   :  { %844 = vtanh.f32 %v350_v17 }
 0x19f   :  { %846 = vtanh.f32 %v351_v20 }
 0x1a4   :  { %v841_v22 = vpop.eup %840  ;;  %817 = vmatpush1.bf16.xpose.msra.mxu0 %v816_v21 }
 0x1a5   :  { %v843_v24 = vpop.eup %842  ;;  %v362_v26 = vadd.f32 1.0, %v841_v22 }
 0x1a6   :  { %v363_v28 = vadd.f32 1.0, %v843_v24 }
 0x1a7   :  { %v370_v33 = vmul.f32 %v362_v26, %v306_v29 }
 0x1a8   :  { %v845_v30 = vpop.eup %844  ;;  %v371_v31 = vmul.f32 %v363_v28, %v307_v27 }
 0x1a9   :  { %v847_v32 = vpop.eup %846  ;;  %v366_v34 = vadd.f32 1.0, %v845_v30 }
 0x1aa   :  { %586 = vmatprep.mubr.f32.mxu0 %v371_v31  ;;  %v367_v36 = vadd.f32 1.0, %v847_v32 }
 0x1ab   :  { %587 = vmatmul.mubr.f32.vlgmr.msra.gmra.mrb[0].mxu0 %v370_v33  ;;  %v374_v39 = vmul.f32 %v366_v34, %v310_v37 }
 0x1ac   :  { %v375_v38 = vmul.f32 %v367_v36, %v311_v35 }
 0x1ae   :  { %591 = vmatprep.mubr.f32.mxu0 %v375_v38 }
 0x1af   :  { %592 = vmatmul.mubr.f32.gmra.mrb[2].mxu0 %v374_v39 }
 0x27e   :  { %v588_v41 = vpop.f32.mrb[0].mxu0 }
 0x27f   :  { %v818_v42 = vadd.f32 %v617_v40, %v588_v41  ;;  %v590_v43 = vpop.f32.mrb[1].mxu0 }
 0x281   :  { %597 = vst [vmem:[#allocation8] sm:$0xff] %v818_v42 }
 0x282   :  { %v593_v44 = vpop.f32.mrb[2].mxu0 }
 0x283   :  { %v819_v45 = vadd.f32 %v617_v40, %v593_v44  ;;  %v595_v46 = vpop.f32.mrb[3].mxu0 }
 0x285   :  { %598 = vst [vmem:[#allocation8 + $0x8] sm:$0xff] %v819_v45 }
 0x286   :  { %925 = shalt.err (!%p922_p0)
}
 0x287   :  { %s926_s14 = scalar_lea.hbm %s1073_s5, 256 }
 0x288   :  { %p927_p1 = scmp.ne.s32.totalorder %s1073_s5, %s926_s14  ;;  %p930_p2 = scmp.lt.u32.totalorder %s926_s14, %s1073_s5 }
 0x28a   :  { %p932_p3 = pnand %p930_p2, %p927_p1 }
 0x28c   :  { %935 = shalt.err (!%p932_p3)
}
 0x28d   :  { %610 = dma.vmem_to_hbm [thread:$0]  %s605_s11, 256, %s1073_s5, [#allocation4], %s944_s30, %s944_s30, %s945_s6  }
 0x28e   :  { %940 = dma.done.wait [#allocation4], 256  }
 0x28f   :  { %941 = vsyncadd [#allocation4], 4294967040 }
 0x290   :  { %614 = vsyncpa [#allocation3], 1 }
 0x291   :  { %615 = vsyncpa [#allocation6], 1 }
 0x292   :  { %616 = vsyncpa [#allocation4], 1 }

</bundles_post_ra>
